<compile_context>
chip_gen: v7x
topology: tpu7x:2x2x1
jax: 0.10.0
libtpu: 0.0.40
codegen_flags: <defaults>
</compile_context>

<pallas_src>
import functools

import jax
import jax.numpy as jnp
from jax import lax
from jax.experimental import pallas as pl
from jax.experimental.pallas import tpu as pltpu


def _gcn_kernel(x_ref, adj_ref, wt_ref, b_ref, out_ref, *, filter_number, f_out):
    # x_ref:   (TB, F_in, N)     node features, N in lanes (native dtype)
    # adj_ref: (TB, N, N)        GSO; row n = destination node (native dtype)
    # wt_ref:  (K*F_out, F_in)   stacked per-tap transposed weights
    # b_ref:   (F_out, 1)        f32 bias column
    # out_ref: (TB, F_out, N)
    k_taps = filter_number
    x = x_ref[...]                                    # (TB, F_in, N)
    adj = adj_ref[...]                                # (TB, N, N)
    tb, _, n = x.shape

    # deg[b, n] = sum_m A[b, n, m] + 1 (self loop), produced lane-dense as a
    # (TB, 1, N) row via one batched ones-row matmul (row sums; the GSO need
    # not be symmetric), accumulated in f32.
    ones_row = jnp.ones((tb, 1, n), dtype=adj.dtype)
    deg = lax.dot_general(ones_row, adj, (((2,), (2,)), ((0,), (0,))),
                          preferred_element_type=jnp.float32)      # (TB, 1, N)
    deg = jnp.maximum(deg + 1.0, 1e-6)                # clamp(min=1e-6)
    d = lax.rsqrt(deg)                                # deg^{-1/2}   (EUP)
    d_sq = d * d                                      # self-loop diagonal part

    # Fused per-tap projections: P[b, k*F_out+o, n] = sum_f W_k[f, o] x[b, f, n]
    # -> one batched matmul instead of K tiny (contraction=F_in) ones per sample.
    wt = jnp.broadcast_to(wt_ref[...][None], (tb,) + wt_ref.shape)  # tiny, hoisted
    p = lax.dot_general(wt, x, (((2,), (1,)), ((0,), (0,))),
                        preferred_element_type=jnp.float32)         # (TB, K*F_out, N)

    # Horner evaluation of sum_k S^k X^T W_k with S = D^-1/2 (A+I) D^-1/2,
    # kept transposed so N stays in lanes; y is the f32 accumulator.
    y = p[:, (k_taps - 1) * f_out:k_taps * f_out, :]                # (TB, F_out, N)
    for k in range(k_taps - 2, -1, -1):
        # prop[b,f,n] = sum_m A[b,n,m] * (d*y)[b,f,m]; LHS cast to the native
        # (possibly bf16) dtype so the MXU runs its fast path, f32 accumulate.
        lhs = (y * d).astype(adj.dtype)
        prop = lax.dot_general(lhs, adj, (((2,), (2,)), ((0,), (0,))),
                               preferred_element_type=jnp.float32)  # (TB, F_out, N)
        y = d * prop + d_sq * y + p[:, k * f_out:(k + 1) * f_out, :]

    out_ref[...] = (y + b_ref[...]).astype(out_ref.dtype)
    # TODO(synk): optional `activation` callable is None in the reference
    # config; a fused activation would be applied to (y + b) here if needed.
    # TODO(synk): for N too large for a single (TB, N, N) block on v7x
    # (64 MiB VMEM), tile the adjacency over source nodes with an inner
    # "arbitrary" reduction axis accumulating `prop` into VMEM scratch
    # (adopt bf16 GSO first -- it is cheaper than re-streaming per hop).


def _device_vmem_bytes():
    try:
        cap = int(pltpu.get_tpu_info().vmem_capacity_bytes)
        if cap > 0:
            return cap
    except Exception:
        pass
    return 64 * 1024 * 1024        # conservative fallback (v7x per-core VMEM)


def _per_sample_vmem_bytes(N, F_in, F_out, K, in_bytes, out_bytes, gso_buffers):
    # Pipelined blocks + in-kernel f32 temporaries + native-dtype matmul LHS.
    blocks = (2 * F_in * N * in_bytes              # feature block (double-buffered)
              + gso_buffers * N * N * in_bytes     # GSO block
              + 2 * F_out * N * out_bytes)         # output block
    temps = 4 * ((K + 2) * F_out * N + 4 * N)      # f32 P, y, prop, deg/d/d_sq rows
    temps += F_out * N * in_bytes                  # propagation LHS copy
    return blocks + temps


def _pick_batch_tile(B, N, F_in, F_out, K, in_bytes, out_bytes, budget_bytes,
                     gso_buffers):
    per_sample = _per_sample_vmem_bytes(N, F_in, F_out, K, in_bytes, out_bytes,
                                        gso_buffers)
    fixed = 3 * 4 * K * F_out * F_in + 2 * 4 * F_out    # weights (+broadcast), bias
    cap = max(1, min(B, (budget_bytes - fixed) // max(per_sample, 1)))
    best_key, best_tile = None, 1
    for tile in range(1, cap + 1):
        if B % tile:
            continue
        steps = B // tile
        # Prefer >= 4 grid steps (DMA pipeline steady state) and an even step
        # count (keeps both v7x TensorCores busy), then the largest tile.
        key = (steps >= 4 or B < 4, steps % 2 == 0 or B % 2 == 1, tile)
        if best_key is None or key > best_key:
            best_key, best_tile = key, tile
    return best_tile


def gcn_layer_forward(node_feats, gso, W, b, filter_number, *,
                      batch_tile=None, compute_dtype=None, gso_buffers=2):
    """GCNLayer.forward.  node_feats: [B, F_in, N], gso: [B, N, N],
    W: [F_in*K, F_out], b: [F_out] or None.  Returns [B, F_out, N].

    compute_dtype: optional dtype (e.g. jnp.bfloat16) used for the features,
    GSO and weights fed to the MXU; accumulation stays f32.
    gso_buffers: pipeline depth for the N^2 GSO stream (3 can hide DMA jitter
    on 128 MiB-VMEM parts; keep 2 on v7x).
    """
    B, F_in, N = node_feats.shape
    FK, F_out = W.shape
    assert FK == F_in * filter_number
    assert gso.shape == (B, N, N)
    out_dtype = node_feats.dtype

    if compute_dtype is not None:
        node_feats = node_feats.astype(compute_dtype)
    in_dtype = node_feats.dtype
    gso = gso.astype(in_dtype)

    # Tiny wrapper-side reshapes only: stacked per-tap transposed weights
    # (K*F_out, F_in) in the MXU input dtype, and an f32 bias column.
    Wt = jnp.transpose(W.reshape(filter_number, F_in, F_out), (0, 2, 1))
    Wt = Wt.reshape(filter_number * F_out, F_in).astype(in_dtype)
    if b is None:
        b = jnp.zeros((F_out,), dtype=jnp.float32)
    b_col = b.astype(jnp.float32).reshape(F_out, 1)

    # Lane-dense stores / full MXU lanes for small graphs: zero-pad N to 128.
    # Padded nodes get degree 1 (self loop only) and contribute nothing.
    n_pad = 128 if N < 128 else N
    if n_pad != N:
        node_feats = jnp.pad(node_feats, ((0, 0), (0, 0), (0, n_pad - N)))
        gso = jnp.pad(gso, ((0, 0), (0, n_pad - N), (0, n_pad - N)))

    in_bytes = jnp.dtype(in_dtype).itemsize
    out_bytes = jnp.dtype(out_dtype).itemsize
    vmem_cap = _device_vmem_bytes()
    vmem_limit = max(min((vmem_cap * 3) // 4, vmem_cap - (8 << 20)), 32 << 20)
    budget = vmem_limit // 2       # blocks + temporaries use at most half

    if batch_tile is None:
        batch_tile = _pick_batch_tile(B, n_pad, F_in, F_out, filter_number,
                                      in_bytes, out_bytes, budget, gso_buffers)
    assert B % batch_tile == 0
    grid_b = B // batch_tile

    gso_block = (batch_tile, n_pad, n_pad)
    if gso_buffers == 2:
        gso_spec = pl.BlockSpec(gso_block, lambda bi: (bi, 0, 0))
    else:
        gso_spec = pl.BlockSpec(gso_block, lambda bi: (bi, 0, 0),
                                pipeline_mode=pl.Buffered(gso_buffers))

    kernel = functools.partial(_gcn_kernel, filter_number=filter_number,
                               f_out=F_out)

    out = pl.pallas_call(
        kernel,
        out_shape=jax.ShapeDtypeStruct((B, F_out, n_pad), out_dtype),
        grid_spec=pltpu.PrefetchScalarGridSpec(
            num_scalar_prefetch=0,
            grid=(grid_b,),
            in_specs=[
                pl.BlockSpec((batch_tile, F_in, n_pad), lambda bi: (bi, 0, 0)),
                gso_spec,
                pl.BlockSpec((filter_number * F_out, F_in), lambda bi: (0, 0)),
                pl.BlockSpec((F_out, 1), lambda bi: (0, 0)),
            ],
            out_specs=pl.BlockSpec((batch_tile, F_out, n_pad),
                                   lambda bi: (bi, 0, 0)),
        ),
        compiler_params=pltpu.CompilerParams(
            dimension_semantics=("parallel",),
            vmem_limit_bytes=int(vmem_limit)),
    )(node_feats, gso, Wt, b_col)

    if n_pad != N:
        out = out[:, :, :N]
    return out


def _reference_forward(node_feats, gso, W, b, filter_number):
    """Pure-JAX reference matching the PyTorch module."""
    B, F_in, N = node_feats.shape
    eye = jnp.eye(N, dtype=gso.dtype)[None]
    a_loop = gso + eye
    deg = jnp.maximum(a_loop.sum(axis=2), 1e-6)
    d_inv_sqrt = deg ** -0.5
    adj_norm = a_loop * d_inv_sqrt[:, :, None] * d_inv_sqrt[:, None, :]
    cur = node_feats
    z_hops = [cur]
    for _ in range(1, filter_number):
        cur = jnp.einsum("bnm,bfm->bfn", adj_norm, cur)
        z_hops.append(cur)
    z = jnp.concatenate(z_hops, axis=1)                    # [B, F_in*K, N]
    out = jnp.einsum("bfn,fo->bno", z, W) + b
    return jnp.transpose(out, (0, 2, 1))                   # [B, F_out, N]


if __name__ == "__main__":
    # Small shapes consistent with the module's forward.
    B, F_in, N = 2, 4, 16
    F_out = 32
    filter_number = 3

    key = jax.random.PRNGKey(0)
    kx, ka, kw = jax.random.split(key, 3)

    node_feats = jax.random.normal(kx, (B, F_in, N), dtype=jnp.float32)

    # Symmetric random adjacency (GSO), zero diagonal.
    a_raw = jax.random.uniform(ka, (B, N, N), dtype=jnp.float32)
    adj = (a_raw + jnp.transpose(a_raw, (0, 2, 1))) * 0.5
    adj = adj * (1.0 - jnp.eye(N, dtype=jnp.float32)[None])

    # Xavier-uniform W (fan_in = F_in*K, fan_out = F_out), zero bias.
    fan_in, fan_out = F_in * filter_number, F_out
    bound = (6.0 / (fan_in + fan_out)) ** 0.5
    W = jax.random.uniform(kw, (fan_in, fan_out), dtype=jnp.float32,
                           minval=-bound, maxval=bound)
    b = jnp.zeros((F_out,), dtype=jnp.float32)

    ref = _reference_forward(node_feats, adj, W, b, filter_number)

    # Native f32 path (no in-kernel upcasts, f32 MXU accumulate).
    out = jax.block_until_ready(
        gcn_layer_forward(node_feats, adj, W, b, filter_number))
    assert out.shape == (B, F_out, N)
    assert jnp.allclose(out, ref, atol=1e-4, rtol=1e-4), "f32 mismatch vs reference"

    # bf16 compute knob: halves the dominant N^2 HBM/VMEM traffic and uses the
    # bf16-native MXU path; validated against the f32 reference at a looser tol.
    out_bf16 = jax.block_until_ready(
        gcn_layer_forward(node_feats, adj, W, b, filter_number,
                          compute_dtype=jnp.bfloat16))
    assert out_bf16.shape == (B, F_out, N)
    assert jnp.allclose(out_bf16, ref, atol=1e-1, rtol=1e-1), "bf16 mismatch vs reference"

    print("KERNEL_OK")
</pallas_src>

<mosaic_0001>
module attributes {stable_mosaic.version = 11 : i64} {
  func.func @_gcn_kernel(%arg0: i32, %arg1: memref<1x4x128xf32, #tpu.memory_space<vmem>>, %arg2: memref<1x128x128xf32, #tpu.memory_space<vmem>>, %arg3: memref<96x4xf32, #tpu.memory_space<vmem>>, %arg4: memref<32x1xf32, #tpu.memory_space<vmem>>, %arg5: memref<1x32x128xf32, #tpu.memory_space<vmem>>) attributes {dimension_semantics = [#tpu.dimension_semantics<parallel>], iteration_bounds = array<i64: 2>, scalar_prefetch = 0 : i64, scratch_operands = 0 : i64, tpu.core_type = #tpu.core_type<tc>, window_params = [{transform_indices = @transform_0, window_bounds = array<i64: 1, 4, 128>}, {transform_indices = @transform_1, window_bounds = array<i64: 1, 128, 128>}, {pipeline_mode = #tpu.pipeline_mode<synchronous>, transform_indices = @transform_2, window_bounds = array<i64: 96, 4>}, {pipeline_mode = #tpu.pipeline_mode<synchronous>, transform_indices = @transform_3, window_bounds = array<i64: 32, 1>}, {transform_indices = @transform_4, window_bounds = array<i64: 1, 32, 128>}]} {
    %c0 = arith.constant 0 : index
    %c0_0 = arith.constant 0 : index
    %c0_1 = arith.constant 0 : index
    %0 = vector.load %arg1[%c0, %c0_0, %c0_1] : memref<1x4x128xf32, #tpu.memory_space<vmem>>, vector<1x4x128xf32>
    %c0_2 = arith.constant 0 : index
    %c0_3 = arith.constant 0 : index
    %c0_4 = arith.constant 0 : index
    %1 = vector.load %arg2[%c0_2, %c0_3, %c0_4] : memref<1x128x128xf32, #tpu.memory_space<vmem>>, vector<1x128x128xf32>
    %cst = arith.constant 1.000000e+00 : f32
    %2 = vector.broadcast %cst : f32 to vector<1x1x128xf32>
    %cst_5 = arith.constant dense<0.000000e+00> : vector<1x1x128xf32>
    %3 = tpu.matmul %2, %1, %cst_5 {dimension_numbers = #tpu.dot_dimension_numbers<[2], [2], [1], [1], [0, 0, 0, 1, 1, 1], [0], [0]>} : vector<1x1x128xf32>, vector<1x128x128xf32>, vector<1x1x128xf32> -> vector<1x1x128xf32>
    %cst_6 = arith.constant 1.000000e+00 : f32
    %4 = vector.broadcast %cst_6 : f32 to vector<1x1x128xf32>
    %5 = arith.addf %3, %4 : vector<1x1x128xf32>
    %cst_7 = arith.constant 9.99999997E-7 : f32
    %6 = vector.broadcast %cst_7 : f32 to vector<1x1x128xf32>
    %7 = arith.maximumf %5, %6 : vector<1x1x128xf32>
    %8 = math.rsqrt %7 : vector<1x1x128xf32>
    %9 = arith.mulf %8, %8 : vector<1x1x128xf32>
    %c0_8 = arith.constant 0 : index
    %c0_9 = arith.constant 0 : index
    %10 = vector.load %arg3[%c0_8, %c0_9] : memref<96x4xf32, #tpu.memory_space<vmem>>, vector<96x4xf32>
    %11 = vector.shape_cast %10 : vector<96x4xf32> to vector<1x96x4xf32>
    %cst_10 = arith.constant dense<0.000000e+00> : vector<1x96x128xf32>
    %12 = tpu.matmul %11, %0, %cst_10 {dimension_numbers = #tpu.dot_dimension_numbers<[2], [1], [1], [2], [0, 0, 0, 1, 1, 2], [0], [0]>} : vector<1x96x4xf32>, vector<1x4x128xf32>, vector<1x96x128xf32> -> vector<1x96x128xf32>
    %13 = vector.extract_strided_slice %12 {offsets = [0, 64, 0], sizes = [1, 32, 128], strides = [1, 1, 1]} : vector<1x96x128xf32> to vector<1x32x128xf32>
    %14 = vector.broadcast %8 : vector<1x1x128xf32> to vector<1x32x128xf32>
    %15 = arith.mulf %13, %14 : vector<1x32x128xf32>
    %cst_11 = arith.constant dense<0.000000e+00> : vector<1x32x128xf32>
    %16 = tpu.matmul %15, %1, %cst_11 {dimension_numbers = #tpu.dot_dimension_numbers<[2], [2], [1], [1], [0, 0, 0, 1, 1, 1], [0], [0]>} : vector<1x32x128xf32>, vector<1x128x128xf32>, vector<1x32x128xf32> -> vector<1x32x128xf32>
    %17 = vector.broadcast %8 : vector<1x1x128xf32> to vector<1x32x128xf32>
    %18 = arith.mulf %17, %16 : vector<1x32x128xf32>
    %19 = vector.broadcast %9 : vector<1x1x128xf32> to vector<1x32x128xf32>
    %20 = arith.mulf %19, %13 : vector<1x32x128xf32>
    %21 = arith.addf %18, %20 : vector<1x32x128xf32>
    %22 = vector.extract_strided_slice %12 {offsets = [0, 32, 0], sizes = [1, 32, 128], strides = [1, 1, 1]} : vector<1x96x128xf32> to vector<1x32x128xf32>
    %23 = arith.addf %21, %22 : vector<1x32x128xf32>
    %24 = vector.broadcast %8 : vector<1x1x128xf32> to vector<1x32x128xf32>
    %25 = arith.mulf %23, %24 : vector<1x32x128xf32>
    %cst_12 = arith.constant dense<0.000000e+00> : vector<1x32x128xf32>
    %26 = tpu.matmul %25, %1, %cst_12 {dimension_numbers = #tpu.dot_dimension_numbers<[2], [2], [1], [1], [0, 0, 0, 1, 1, 1], [0], [0]>} : vector<1x32x128xf32>, vector<1x128x128xf32>, vector<1x32x128xf32> -> vector<1x32x128xf32>
    %27 = vector.broadcast %8 : vector<1x1x128xf32> to vector<1x32x128xf32>
    %28 = arith.mulf %27, %26 : vector<1x32x128xf32>
    %29 = vector.broadcast %9 : vector<1x1x128xf32> to vector<1x32x128xf32>
    %30 = arith.mulf %29, %23 : vector<1x32x128xf32>
    %31 = arith.addf %28, %30 : vector<1x32x128xf32>
    %32 = vector.extract_strided_slice %12 {offsets = [0, 0, 0], sizes = [1, 32, 128], strides = [1, 1, 1]} : vector<1x96x128xf32> to vector<1x32x128xf32>
    %33 = arith.addf %31, %32 : vector<1x32x128xf32>
    %c0_13 = arith.constant 0 : index
    %c0_14 = arith.constant 0 : index
    %34 = vector.load %arg4[%c0_13, %c0_14] : memref<32x1xf32, #tpu.memory_space<vmem>>, vector<32x1xf32>
    %35 = vector.shape_cast %34 : vector<32x1xf32> to vector<1x32x1xf32>
    %36 = vector.broadcast %35 : vector<1x32x1xf32> to vector<1x32x128xf32>
    %37 = arith.addf %33, %36 : vector<1x32x128xf32>
    %c0_15 = arith.constant 0 : index
    %c0_16 = arith.constant 0 : index
    %c0_17 = arith.constant 0 : index
    %38 = vector.load %arg5[%c0_15, %c0_16, %c0_17] : memref<1x32x128xf32, #tpu.memory_space<vmem>>, vector<1x32x128xf32>
    tpu.vector_store %arg5[%c0_15, %c0_16, %c0_17], %37 {strides = array<i32>} : memref<1x32x128xf32, #tpu.memory_space<vmem>>, vector<1x32x128xf32>,
    return
  }
  func.func @transform_0(%arg0: i32) -> (i32, i32, i32) {
    %c0_i32 = arith.constant 0 : i32
    %c0_i32_0 = arith.constant 0 : i32
    %c0_i32_1 = arith.constant 0 : i32
    return %arg0, %c0_i32, %c0_i32_0 : i32, i32, i32
  }
  func.func @transform_1(%arg0: i32) -> (i32, i32, i32) {
    %c0_i32 = arith.constant 0 : i32
    %c0_i32_0 = arith.constant 0 : i32
    %c0_i32_1 = arith.constant 0 : i32
    return %arg0, %c0_i32, %c0_i32_0 : i32, i32, i32
  }
  func.func @transform_2(%arg0: i32) -> (i32, i32) {
    %c0_i32 = arith.constant 0 : i32
    %c0_i32_0 = arith.constant 0 : i32
    %c0_i32_1 = arith.constant 0 : i32
    return %c0_i32, %c0_i32_0 : i32, i32
  }
  func.func @transform_3(%arg0: i32) -> (i32, i32) {
    %c0_i32 = arith.constant 0 : i32
    %c0_i32_0 = arith.constant 0 : i32
    %c0_i32_1 = arith.constant 0 : i32
    return %c0_i32, %c0_i32_0 : i32, i32
  }
  func.func @transform_4(%arg0: i32) -> (i32, i32, i32) {
    %c0_i32 = arith.constant 0 : i32
    %c0_i32_0 = arith.constant 0 : i32
    %c0_i32_1 = arith.constant 0 : i32
    return %arg0, %c0_i32, %c0_i32_0 : i32, i32, i32
  }
}

</mosaic_0001>

<bundles_post_ra>
// kernel: tpu_custom_call.1
= control target key start
LH: loop header
LB: loop body
LE: loop exit
PB: predicated region body
PF: predicated region fallthrough
CT: control target
= control target key end

     0   :  { %9 = vsyncpa [#allocation3], 0  ;;  %s1756_s0 = inlined_call_operand.vmem [shape: f32[2,4,128], index: 0, kind: input, shape index: {}]   ;;  %s1757_s1 = inlined_call_operand.hbm [shape: f32[2,128,128], index: 1, kind: input, shape index: {}]   ;;  %s1758_s2 = inlined_call_operand.vmem [shape: f32[96,4], index: 2, kind: input, shape index: {}]   ;;  %s1759_s3 = inlined_call_operand.vmem [shape: f32[32,1], index: 3, kind: input, shape index: {}]   ;;  %s1760_s4 = inlined_call_operand.hbm [shape: f32[2,32,128], index: 4, kind: output, shape index: {}]  }
   0x1   :  { %11 = vsyncpa [#allocation3 + $0x1], 0 }
   0x2   :  { %12 = vsyncpa [#allocation4], 0 }
   0x3   :  { %14 = vsyncpa [#allocation4 + $0x1], 0  ;;  %s1378_s15 = smov 0   ;;  %s1380_s16 = smov 0  }
   0x4   :  { %s1382_s17 = smov 0   ;;  %s1384_s18 = smov 0  }
   0x5 LB: > { %s1399_s19 = sadd.s32 4294967295, %s1340_s18   ;;  %s850_s20 = sadd.s32 4294967294, %s1340_s18   ;;  %s1340_s18 = sphi %s1384_s18, %s1773_s18   ;;  %s1336_s17 = sphi %s1382_s17, %s1772_s17   ;;  %s1332_s16 = sphi %s1380_s16, %s1771_s16   ;;  %s1328_s15 = sphi %s1378_s15, %s1770_s15  }
   0x6   : > { %s1403_s21 = sadd.s32 1, %s1340_s18   ;;  %s53_s22 = sadd.s32 1, %s1336_s17 }
   0x7   : > { %s50_s23 = ssub.s32 %s1340_s18, %s1403_s21  ;;  %p60_p0 = scmp.ne.s32.totalorder %s1336_s17, %s1332_s16 }
   0x8   : > { %p51_p1 = scmp.eq.s32.totalorder %s50_s23, 0  ;;  %p61_p2 = scmp.eq.s32.totalorder %s1340_s18, 0 }
   0x9   : > { %p66_p3 = scmp.ne.s32.totalorder %s1332_s16, %s1328_s15  ;;  %p67_p4 = scmp.eq.s32.totalorder %s1399_s19, 0 }
   0xa   : > { %s1415_s24 = scalar_select %p51_p1, %s1336_s17, %s53_s22  }
   0xb   : > { %p1417_p5 = por %p61_p2, %p60_p0  ;;  %p1421_p6 = por %p67_p4, %p66_p3 }
   0xc   : > { %p132_p7 = scmp.eq.s32.totalorder %s1399_s19, 1  ;;  %p138_p8 = scmp.eq.s32.totalorder %s850_s20, 1 }
   0xd   : > { %p1197_p10 = scmp.lt.s32.totalorder %s1340_s18, 2  ;;  %s171_s29 = sand.u32 1, %s1336_s17  }
   0xe   : > { %p1428_p11 = por %p132_p7, %p60_p0  ;;  %p1432_p12 = por %p138_p8, %p66_p3 }
   0xf   : > { %s878_s30 = sshll.u32 %s1340_s18, 11  ;;  %s853_s5 = sshll.u32 %s171_s29, 7 }
  0x10   : > { %s1764_s27 = scalar_select %p1428_p11, 1, 0 }
  0x11   : > { %s1765_s28 = scalar_select %p1432_p12, 1, 0 }
  0x12   : > { %s1441_s8 = scalar_lea.hbm %s1757_s1, %s878_s30  ;;  %s175_s9 = scalar_lea.vmem [#allocation2], %s853_s5 }
  0x13   : > { %s182_s10 = sshll.u32 %s175_s9, 4  ;;  %p1445_p13 = pnand %p1197_p10, %p1417_p5  ;;  %s1449_s10 = int_to_ptr.vmem [resolvable:$true] %s182_s10 }
  0x14   : > { %s1451_s12 = scalar_lea.sflag [#allocation3], %s171_s29  ;;  %s1244_s13 = scalar_lea.hbm %s1441_s8, 2048 }
  0x15   : > { %p1245_p0 = scmp.ne.s32.totalorder %s1441_s8, %s1244_s13  ;;  %p1246_p1 = pneg %p1445_p13 }
  0x16   : > { %s1249_s22 = scalar_lea.hbm %s1757_s1, 4096  ;;  %p1250_p4 = scmp.lt.u32.totalorder %s1441_s8, %s1757_s1 }
  0x17   : > { %p1247_p2 = pnand %p1246_p1, %p1245_p0  ;;  %p1251_p5 = scmp.lt.u32.totalorder %s1249_s22, %s1244_s13 }
  0x18   : > { %p1253_p8 = scmp.lt.u32.totalorder %s1244_s13, %s1441_s8 }
  0x19   : > { %p1248_p3 = pneg %p1247_p2  ;;  %p1252_p7 = por %p1251_p5, %p1250_p4 }
  0x1b   : > { %p1254_p10 = por %p1253_p8, %p1252_p7 }
  0x1d   : > { %p1255_p9 = pnand %p1254_p10, %p1248_p3 }
  0x1f   : > { %1258 = shalt.err (!%p1255_p9)
}
  0x20   : > { %s1259_s29 = scalar_lea.vmem %s1449_s10, 2048  ;;  %s1342_s30 = smov [#allocation2]  }
  0x21   : > { %p1260_p0 = scmp.ne.s32.totalorder %s1449_s10, %s1259_s29  ;;  %s1264_s5 = sshll.u32 %s1342_s30, 4  ;;  %s1265_s5 = int_to_ptr.vmem [resolvable:$false] %s1264_s5 }
  0x22   : > { %s1266_s6 = scalar_lea.vmem %s1265_s5, 4096  ;;  %p1267_p11 = scmp.lt.s32.totalorder %s1449_s10, %s1265_s5 }
  0x23   : > { %p1262_p2 = pnand %p1260_p0, %p1246_p1  ;;  %p1268_p4 = scmp.lt.s32.totalorder %s1266_s6, %s1259_s29 }
  0x25   : > { %p1263_p12 = pneg %p1262_p2  ;;  %p1269_p5 = por %p1268_p4, %p1267_p11 }
  0x27   : > { %p1270_p7 = pnand %p1269_p5, %p1263_p12 }
  0x29   : > { %1273 = shalt.err (!%p1270_p7)
}
  0x2a   : > { %s1343_s7 = smov 128   ;;  %s1344_s9 = smov 8  }
  0x2b   : > { %1192 = dma.hbm_to_vmem [thread:$0]  (!%p1445_p13), %s1441_s8, 2048, %s1449_s10, %s1451_s12, %s1343_s7, %s1343_s7, %s1344_s9  }
  0x2c   : > { %p856_p9 = scmp.ge.s32.totalorder %s1340_s18, 1  ;;  %p190_p1 = scmp.lt.s32.totalorder %s1340_s18, 3 }
  0x2e   : > { %p191_p3 = pnand %p856_p9, %p190_p1 }
  0x2f   : > { %s1482_s13 = sand.u32 (!%p191_p3), 1, %s1332_s16  }
  0x30   : > { %194 = sbr.rel (%p191_p3) target bundleno = 817 (0x331), region = 36  ;;  %s857_s14 = sshll.u32 (!%p191_p3), %s1482_s13, 7 }
  0x31   : > { %s197_s20 = scalar_lea.sflag (!%p191_p3), [#allocation3], %s1482_s13  ;;  %s1486_s22 = scalar_lea.vmem (!%p191_p3), [#allocation2], %s857_s14 }
  0x37   : > { %1319 = dma.done.wait (%p1421_p6), %s197_s20, 2048  }
  0x38   : > { %1321 = vsyncadd (%p1421_p6), %s197_s20, 4294965248  ;;  %p229_p11 = scmp.lt.s32.totalorder %s1399_s19, 1  ;;  %v1345_v0 = vmov 0.0|0.0   ;;  %vm1346_vm0 = vmmov 0   ;;  %v1347_v1 = vmov 0.0   ;;  %v234_v2 = vld [vmem:[%s1486_s22] sm:$0xff]  ;;  %v501_v56 = vlaneseq }
  0x39   : > { %1081 = vmatprep.subr.bf16.mxu0 %v1345_v0  ;;  %982 = vmatprep.mubr.msk.f32.mxu0 %vm1346_vm0, %v1347_v1  ;;  %v235_v3 = vld [vmem:[%s1486_s22 + $0x8] sm:$0xff]  ;;  %vm372_vm1 = vcmask 1043456   ;;  %vm335_vm2 = vcmask 31744   ;;  %v236_v5 = vld [vmem:[%s1486_s22 + $0x10] sm:$0xff]  ;;  %v237_v6 = vld [vmem:[%s1486_s22 + $0x18] sm:$0xff]  ;;  %v1348_v39 = vmov 1.0  }
  0x3a   : > { %s230_s8 = scalar_select %p229_p11, %s1399_s19, 1  ;;  %v1497_v4 = vpack.c.bf16 %v235_v3, %v234_v2  ;;  %v323_v8 = vld [vmem:[%s1758_s2] sm:$0xff]  ;;  %v324_v9 = vld [vmem:[%s1758_s2 + $0x8] sm:$0xff]  ;;  %v325_v10 = vld [vmem:[%s1758_s2 + $0x10] sm:$0xff]  ;;  %v1516_v11 = vpack.c.bf16 %v237_v6, %v236_v5  ;;  %v502_v57 = vshrl.u32 %v501_v56, 7  ;;  %v1349_v5 = vmov 0  }
  0x3b   : > { %987 = vmatprep.mubr.msk.f32.mxu1 %vm335_vm2, %v323_v8  ;;  %v326_v12 = vld [vmem:[%s1758_s2 + $0x18] sm:$0xff]  ;;  %v327_v13 = vld [vmem:[%s1758_s2 + $0x20] sm:$0xff]  ;;  %v239_v15 = vld [vmem:[%s1486_s22 + $0x28] sm:$0xff]  ;;  %1240 = vset.pattern.permute.xlu0 %v1349_v5  ;;  %s858_s25 = sshll.u32 %s1482_s13, 5  ;;  %s879_s5 = sshll.u32 %s1399_s19, 9 }
  0x3c   : > { %s859_s10 = sshll.u32 %s230_s8, 2  ;;  %1083 = vmatpush3.bf16.xpose.msra.mxu0 %v1497_v4  ;;  %v238_v14 = vld [vmem:[%s1486_s22 + $0x20] sm:$0xff]  ;;  %v328_v16 = vld [vmem:[%s1758_s2 + $0x28] sm:$0xff]  ;;  %v329_v17 = vld [vmem:[%s1758_s2 + $0x30] sm:$0xff]  ;;  %v503_v58 = vsub.s32 0, %v502_v57  ;;  %1241 = vset.pattern.permute.xlu1 %v1349_v5  ;;  %s228_s29 = scalar_lea.vmem [#allocation5], %s858_s25 }
  0x3d   : > { %s232_s12 = scalar_lea.vmem %s1756_s0, %s859_s10  ;;  %1084 = vmatprep.subr.bf16.mxu0 %v1345_v0  ;;  %v1540_v18 = vpack.c.bf16 %v239_v15, %v238_v14  ;;  %v330_v19 = vld [vmem:[%s1758_s2 + $0x38] sm:$0xff]  ;;  %v331_v20 = vld [vmem:[%s1758_s2 + $0x40] sm:$0xff]  ;;  %v240_v21 = vld [vmem:[%s1486_s22 + $0x30] sm:$0xff]  ;;  %s765_s30 = sshll.u32 %s228_s29, 4  ;;  %s1706_s30 = int_to_ptr.vmem [resolvable:$true] %s765_s30 }
  0x3e   : > { %v233_v7 = vld [vmem:[%s232_s12] sm:$0xf]  ;;  %v241_v22 = vld [vmem:[%s1486_s22 + $0x38] sm:$0xff]  ;;  %v332_v23 = vld [vmem:[%s1758_s2 + $0x48] sm:$0xff]  ;;  %s1712_s9 = scalar_lea.hbm %s1760_s4, %s879_s5  ;;  %s752_s19 = scalar_lea.sflag [#allocation4], %s1482_s13 }
  0x3f   : > { %985 = vmatprep.subr.msk.mxu1 %vm372_vm1, %v233_v7  ;;  %v333_v24 = vld [vmem:[%s1758_s2 + $0x50] sm:$0xff]  ;;  %v1564_v25 = vpack.c.bf16 %v241_v22, %v240_v21  ;;  %v334_v26 = vld [vmem:[%s1758_s2 + $0x58] sm:$0xff]  ;;  %v242_v27 = vld [vmem:[%s1486_s22 + $0x40] sm:$0xff]  ;;  %s1274_s14 = scalar_lea.vmem %s1706_s30, 512  ;;  %p1767_p12 = scmp.ne.s32.totalorder %s1764_s27, 0 }
  0x40   : > { %986 = vmatpush3.msk.msra.mxu1 %vm372_vm1, %v233_v7  ;;  %v243_v28 = vld [vmem:[%s1486_s22 + $0x48] sm:$0xff]  ;;  %v244_v30 = vld [vmem:[%s1486_s22 + $0x50] sm:$0xff]  ;;  %v245_v31 = vld [vmem:[%s1486_s22 + $0x58] sm:$0xff]  ;;  %p1275_p6 = scmp.ne.s32.totalorder %s1706_s30, %s1274_s14 }
  0x41   : > { %988 = vmatmul.mubr.msk.f32.vlgmr.msra.gmra.mrb[0].mxu1 %vm335_vm2, %v324_v9  ;;  %1106 = vmatprep.subr.bf16.mxu1 %v1497_v4  ;;  %v1578_v29 = vpack.c.bf16 %v243_v28, %v242_v27  ;;  %v1586_v32 = vpack.c.bf16 %v245_v31, %v244_v30  ;;  %v246_v33 = vld [vmem:[%s1486_s22 + $0x60] sm:$0xff]  ;;  %v247_v34 = vld [vmem:[%s1486_s22 + $0x68] sm:$0xff]  ;;  %v248_v36 = vld [vmem:[%s1486_s22 + $0x70] sm:$0xff] }
  0x42   : > { %990 = vmatprep.mubr.msk.f32.mxu1 %vm335_vm2, %v325_v10  ;;  %v1594_v35 = vpack.c.bf16 %v247_v34, %v246_v33  ;;  %v249_v37 = vld [vmem:[%s1486_s22 + $0x78] sm:$0xff]  ;;  %v719_v3 = vld [vmem:[%s1759_s3] sm:$0xff]  ;;  %v720_v6 = vld [vmem:[%s1759_s3 + $0x8] sm:$0xff]  ;;  %p1276_p13 = pnand %p1275_p6, %p1767_p12  ;;  %s1350_s22 = smov [#allocation5]  }
  0x43   : > { %v1602_v38 = vpack.c.bf16 %v249_v37, %v248_v36  ;;  %725 = vperm.xlu0 %1240, %v719_v3   ;;  %v722_v7 = vld [vmem:[%s1759_s3 + $0x18] sm:$0xff]  ;;  %s1278_s20 = sshll.u32 %s1350_s22, 4  ;;  %s1279_s20 = int_to_ptr.vmem [resolvable:$false] %s1278_s20 }
  0x44   : > { %1086 = vmatpush3.bf16.xpose.msra.mxu0 %v1516_v11  ;;  %p1277_p8 = pneg %p1276_p13  ;;  %s1280_s8 = scalar_lea.vmem %s1279_s20, 1024 }
  0x45   : > { %1087 = vmatprep.subr.bf16.mxu0 %v1345_v0  ;;  %991 = vmatmul.mubr.msk.f32.gmra.mrb[2].mxu1 %vm335_vm2, %v326_v12  ;;  %p1281_p10 = scmp.lt.s32.totalorder %s1706_s30, %s1279_s20  ;;  %p1282_p0 = scmp.lt.s32.totalorder %s1280_s8, %s1274_s14 }
  0x46   : > { %993 = vmatprep.mubr.msk.f32.mxu1 %vm335_vm2, %v327_v13 }
  0x47   : > { %1108 = vmatpush3.bf16.xpose.msra.mxu1 %v1497_v4  ;;  %730 = vperm.xlu0 %1240, %v720_v6   ;;  %p1283_p2 = por %p1282_p0, %p1281_p10 }
  0x48   : > { %1110 = vmatprep.subr.bf16.mxu1 %v1516_v11 }
  0x49   : > { %994 = vmatmul.mubr.msk.f32.gmra.mrb[4].mxu1 %vm335_vm2, %v328_v16  ;;  %p1284_p4 = pnand %p1283_p2, %p1277_p8 }
  0x4a   : > { %996 = vmatprep.mubr.msk.f32.mxu1 %vm335_vm2, %v329_v17 }
  0x4c   : > { %1089 = vmatpush3.bf16.xpose.msra.mxu0 %v1540_v18 }
  0x4d   : > { %1090 = vmatprep.subr.bf16.mxu0 %v1345_v0  ;;  %997 = vmatmul.mubr.msk.f32.gmra.mrb[6].mxu1 %vm335_vm2, %v330_v19 }
  0x4e   : > { %999 = vmatprep.mubr.msk.f32.mxu1 %vm335_vm2, %v331_v20 }
  0x4f   : > { %1112 = vmatpush3.bf16.xpose.msra.mxu1 %v1516_v11 }
  0x50   : > { %1114 = vmatprep.subr.bf16.mxu1 %v1540_v18 }
  0x51   : > { %1000 = vmatmul.mubr.msk.f32.gmra.mrb[8].mxu1 %vm335_vm2, %v332_v23 }
  0x52   : > { %1002 = vmatprep.mubr.msk.f32.mxu1 %vm335_vm2, %v333_v24 }
  0x54   : > { %1092 = vmatpush3.bf16.xpose.msra.mxu0 %v1564_v25 }
  0x55   : > { %1093 = vmatprep.subr.bf16.mxu0 %v1345_v0  ;;  %1003 = vmatmul.mubr.msk.f32.gmra.mrb[10].mxu1 %vm335_vm2, %v334_v26 }
  0x57   : > { %1116 = vmatpush3.bf16.xpose.msra.mxu1 %v1540_v18 }
  0x58   : > { %1118 = vmatprep.subr.bf16.mxu1 %v1564_v25 }
  0x5c   : > { %1095 = vmatpush3.bf16.xpose.msra.mxu0 %v1578_v29 }
  0x5d   : > { %1096 = vmatprep.subr.bf16.mxu0 %v1345_v0 }
  0x5f   : > { %1120 = vmatpush3.bf16.xpose.msra.mxu1 %v1564_v25 }
  0x60   : > { %1122 = vmatprep.subr.bf16.mxu1 %v1578_v29 }
  0x64   : > { %1098 = vmatpush3.bf16.xpose.msra.mxu0 %v1586_v32 }
  0x65   : > { %1099 = vmatprep.subr.bf16.mxu0 %v1345_v0 }
  0x67   : > { %1124 = vmatpush3.bf16.xpose.msra.mxu1 %v1578_v29 }
  0x68   : > { %1126 = vmatprep.subr.bf16.mxu1 %v1586_v32 }
  0x6c   : > { %1101 = vmatpush3.bf16.xpose.msra.mxu0 %v1594_v35 }
  0x6d   : > { %1102 = vmatprep.subr.bf16.mxu0 %v1345_v0 }
  0x6f   : > { %1128 = vmatpush3.bf16.xpose.msra.mxu1 %v1586_v32 }
  0x70   : > { %1130 = vmatprep.subr.bf16.mxu1 %v1594_v35 }
  0x74   : > { %1104 = vmatpush3.bf16.xpose.msra.mxu0 %v1602_v38 }
  0x75   : > { %1138 = vmatprep.subr.bf16.mxu0 %v1497_v4 }
  0x77   : > { %1132 = vmatpush3.bf16.xpose.msra.mxu1 %v1594_v35 }
  0x78   : > { %1134 = vmatprep.subr.bf16.mxu1 %v1602_v38 }
  0x7b   : > { %983 = vmatmul.mubr.f32.vlgmr.msra.gmra.mrb[0].mxu0 %v1348_v39 }
  0x7c   : > { %1140 = vmatpush3.bf16.xpose.msra.mxu0 %v1497_v4 }
  0x7d   : > { %1142 = vmatprep.subr.bf16.mxu0 %v1516_v11 }
  0x7f   : > { %1136 = vmatpush3.bf16.xpose.msra.mxu1 %v1602_v38 }
  0x80   : > { %1169 = vmatprep.subr.bf16.mxu1 %v1497_v4 }
  0x84   : > { %1144 = vmatpush3.bf16.xpose.msra.mxu0 %v1516_v11 }
  0x85   : > { %1146 = vmatprep.subr.bf16.mxu0 %v1540_v18 }
  0x8c   : > { %1148 = vmatpush3.bf16.xpose.msra.mxu0 %v1540_v18 }
  0x8d   : > { %1150 = vmatprep.subr.bf16.mxu0 %v1564_v25 }
  0x94   : > { %1152 = vmatpush3.bf16.xpose.msra.mxu0 %v1564_v25 }
  0x95   : > { %1154 = vmatprep.subr.bf16.mxu0 %v1578_v29 }
  0x9c   : > { %1156 = vmatpush3.bf16.xpose.msra.mxu0 %v1578_v29 }
  0x9d   : > { %1158 = vmatprep.subr.bf16.mxu0 %v1586_v32 }
  0xa4   : > { %1160 = vmatpush3.bf16.xpose.msra.mxu0 %v1586_v32 }
  0xa5   : > { %1162 = vmatprep.subr.bf16.mxu0 %v1594_v35 }
  0xac   : > { %1164 = vmatpush3.bf16.xpose.msra.mxu0 %v1594_v35 }
  0xad   : > { %1166 = vmatprep.subr.bf16.mxu0 %v1602_v38 }
  0xb4   : > { %1168 = vmatpush3.bf16.xpose.msra.mxu0 %v1602_v38 }
 0x114   : > { %v1626_v40 = vpop.f32.mrb[0].mxu1 }
 0x115   : > { %v1628_v41 = vpop.f32.mrb[1].mxu1 }
 0x118   : > { %v1630_v42 = vpop.f32.mrb[2].mxu1 }
 0x119   : > { %v1632_v43 = vpop.f32.mrb[3].mxu1 }
 0x11c   : > { %v1634_v44 = vpop.f32.mrb[4].mxu1 }
 0x11d   : > { %v1636_v45 = vpop.f32.mrb[5].mxu1 }
 0x120   : > { %v1638_v46 = vpop.f32.mrb[6].mxu1 }
 0x121   : > { %v1640_v47 = vpop.f32.mrb[7].mxu1 }
 0x124   : > { %v1001_v48 = vpop.f32.mrb[8].mxu1 }
 0x125   : > { %v482_v49 = vpop.f32.mrb[9].mxu1 }
 0x128   : > { %v1004_v50 = vpop.f32.mrb[10].mxu1 }
 0x129   : > { %v492_v51 = vpop.f32.mrb[11].mxu1 }
 0x14e   : > { %v316_v52 = vpop.f32.mrb[0].mxu0 }
 0x14f   : > { %v317_v53 = vadd.f32 1.0, %v316_v52  ;;  %v984_v54 = vpop.f32.mrb[1].mxu0 }
 0x151   : > { %v320_v55 = vmax.f32 %v317_v53, 1e-06 }
 0x153   : > { %1242 = vrsqrt.f32 %v320_v55 }
 0x15d   : > { %v1243_v59 = vpop.eup %1242 }
 0x15e   : > { %v322_v60 = vmul.f32 %v1243_v59, %v1243_v59  ;;  %v1642_v61 = vrot.slane %v1243_v59, %v503_v58 }
 0x160   : > { %v1644_v62 = vrot.slane %v322_v60, %v503_v58  ;;  %v506_v63 = vmul.f32 %v1001_v48, %v1642_v61  ;;  %v505_v0 = vmul.f32 %v1642_v61, %v482_v49  ;;  %v507_v1 = vmul.f32 %v1642_v61, %v492_v51 }
 0x161   : > { %v508_v2 = vmul.f32 %v1004_v50, %v1642_v61 }
 0x162   : > { %1037 = vmatprep.mubr.f32.mxu1 %v505_v0  ;;  %v603_v9 = vmul.f32 %v1001_v48, %v1644_v62  ;;  %v602_v12 = vmul.f32 %v1644_v62, %v482_v49  ;;  %v605_v17 = vmul.f32 %v1004_v50, %v1644_v62  ;;  %v604_v21 = vmul.f32 %v1644_v62, %v492_v51 }
 0x163   : > { %1038 = vmatmul.mubr.f32.vlgmr.msra.gmra.mrb[12].mxu1 %v506_v63 }
 0x164   : > { %1040 = vmatprep.mubr.f32.mxu1 %v507_v1  ;;  %1177 = vmatpush3.bf16.xpose.msra.mxu1 %v1497_v4  ;;  %v721_v4 = vld [vmem:[%s1759_s3 + $0x10] sm:$0xff] }
 0x165   : > { %1170 = vmatprep.subr.bf16.mxu1 %v1516_v11  ;;  %735 = vperm.xlu1 %1241, %v721_v4  }
 0x167   : > { %1041 = vmatmul.mubr.f32.gmra.mrb[14].mxu1 %v508_v2 }
 0x169   : > { %740 = vperm.xlu1 %1241, %v722_v7  }
 0x16c   : > { %1178 = vmatpush3.bf16.xpose.msra.mxu1 %v1516_v11 }
 0x16d   : > { %1171 = vmatprep.subr.bf16.mxu1 %v1540_v18 }
 0x174   : > { %1179 = vmatpush3.bf16.xpose.msra.mxu1 %v1540_v18 }
 0x175   : > { %1172 = vmatprep.subr.bf16.mxu1 %v1564_v25 }
 0x17c   : > { %1180 = vmatpush3.bf16.xpose.msra.mxu1 %v1564_v25 }
 0x17d   : > { %1173 = vmatprep.subr.bf16.mxu1 %v1578_v29 }
 0x184   : > { %1181 = vmatpush3.bf16.xpose.msra.mxu1 %v1578_v29 }
 0x185   : > { %1174 = vmatprep.subr.bf16.mxu1 %v1586_v32 }
 0x18c   : > { %1182 = vmatpush3.bf16.xpose.msra.mxu1 %v1586_v32  ;;  %v726_v32 = vpop.permute.xlu0 %725 }
 0x18d   : > { %1175 = vmatprep.subr.bf16.mxu1 %v1594_v35 }
 0x194   : > { %1183 = vmatpush3.bf16.xpose.msra.mxu1 %v1594_v35 }
 0x195   : > { %1176 = vmatprep.subr.bf16.mxu1 %v1602_v38 }
 0x19c   : > { %1184 = vmatpush3.bf16.xpose.msra.mxu1 %v1602_v38 }
 0x236   : > { %v1039_v8 = vpop.f32.mrb[12].mxu1 }
 0x237   : > { %v595_v10 = vmul.f32 %v1039_v8, %v1642_v61  ;;  %v575_v11 = vpop.f32.mrb[13].mxu1 }
 0x238   : > { %v594_v13 = vmul.f32 %v575_v11, %v1642_v61 }
 0x239   : > { %v607_v14 = vadd.f32 %v603_v9, %v595_v10 }
 0x23a   : > { %v606_v15 = vadd.f32 %v602_v12, %v594_v13  ;;  %v1042_v16 = vpop.f32.mrb[14].mxu1 }
 0x23b   : > { %v611_v18 = vadd.f32 %v1634_v44, %v607_v14  ;;  %v597_v19 = vmul.f32 %v1042_v16, %v1642_v61  ;;  %v585_v20 = vpop.f32.mrb[15].mxu1  ;;  %v736_v44 = vpop.permute.xlu1 %735 }
 0x23c   : > { %v610_v22 = vadd.f32 %v606_v15, %v1636_v45  ;;  %v596_v23 = vmul.f32 %v585_v20, %v1642_v61 }
 0x23d   : > { %v609_v24 = vadd.f32 %v605_v17, %v597_v19  ;;  %v615_v27 = vmul.f32 %v611_v18, %v1642_v61  ;;  %v708_v35 = vmul.f32 %v611_v18, %v1644_v62 }
 0x23e   : > { %v608_v25 = vadd.f32 %v604_v21, %v596_v23  ;;  %v614_v26 = vmul.f32 %v610_v22, %v1642_v61  ;;  %v707_v38 = vmul.f32 %v610_v22, %v1644_v62 }
 0x23f   : > { %v613_v28 = vadd.f32 %v1638_v46, %v609_v24 }
 0x240   : > { %v612_v29 = vadd.f32 %v608_v25, %v1640_v47  ;;  %1075 = vmatprep.mubr.f32.mxu0 %v614_v26  ;;  %v731_v47 = vpop.permute.xlu0 %730 }
 0x241   : > { %1076 = vmatmul.mubr.f32.vlgmr.msra.gmra.mrb[2].mxu0 %v615_v27  ;;  %v617_v31 = vmul.f32 %v613_v28, %v1642_v61  ;;  %v710_v49 = vmul.f32 %v613_v28, %v1644_v62 }
 0x242   : > { %v616_v30 = vmul.f32 %v612_v29, %v1642_v61  ;;  %v709_v54 = vmul.f32 %v612_v29, %v1644_v62 }
 0x244   : > { %1078 = vmatprep.mubr.f32.mxu1 %v616_v30 }
 0x245   : > { %1079 = vmatmul.mubr.f32.vlgmr.msra.gmra.mrb[16].mxu1 %v617_v31 }
 0x314   : > { %v1077_v33 = vpop.f32.mrb[2].mxu0 }
 0x315   : > { %v704_v34 = vmul.f32 %v1077_v33, %v1642_v61  ;;  %v684_v36 = vpop.f32.mrb[3].mxu0 }
 0x316   : > { %v703_v37 = vmul.f32 %v684_v36, %v1642_v61 }
 0x317   : > { %v712_v39 = vadd.f32 %v708_v35, %v704_v34 }
 0x318   : > { %v711_v45 = vadd.f32 %v707_v38, %v703_v37  ;;  %v1080_v46 = vpop.f32.mrb[16].mxu1 }
 0x319   : > { %v706_v48 = vmul.f32 %v1080_v46, %v1642_v61  ;;  %v694_v50 = vpop.f32.mrb[17].mxu1  ;;  %v716_v51 = vadd.f32 %v1626_v40, %v712_v39 }
 0x31a   : > { %v715_v52 = vadd.f32 %v711_v45, %v1628_v41  ;;  %v705_v53 = vmul.f32 %v694_v50, %v1642_v61  ;;  %v741_v41 = vpop.permute.xlu1 %740 }
 0x31b   : > { %v714_v55 = vadd.f32 %v710_v49, %v706_v48  ;;  %v744_v56 = vadd.f32 %v731_v47, %v716_v51 }
 0x31c   : > { %v743_v57 = vadd.f32 %v726_v32, %v715_v52  ;;  %v713_v58 = vadd.f32 %v709_v54, %v705_v53 }
 0x31d   : > { %748 = vst [vmem:[%s228_s29 + $0x8] sm:$0xff] %v744_v56  ;;  %v718_v59 = vadd.f32 %v1630_v42, %v714_v55 }
 0x31e   : > { %747 = vst [vmem:[%s228_s29] sm:$0xff] %v743_v57  ;;  %v717_v40 = vadd.f32 %v713_v58, %v1632_v43 }
 0x31f   : > { %v746_v60 = vadd.f32 %v741_v41, %v718_v59 }
 0x320   : > { %v745_v61 = vadd.f32 %v736_v44, %v717_v40 }
 0x321   : > { %750 = vst [vmem:[%s228_s29 + $0x18] sm:$0xff] %v746_v60 }
 0x322   : > { %749 = vst [vmem:[%s228_s29 + $0x10] sm:$0xff] %v745_v61 }
 0x323   : > { %1287 = shalt.err (!%p1284_p4)
}
 0x324   : > { %s1288_s10 = scalar_lea.hbm %s1712_s9, 512  ;;  %s1292_s12 = scalar_lea.hbm %s1760_s4, 1024 }
 0x325   : > { %p1289_p5 = scmp.ne.s32.totalorder %s1712_s9, %s1288_s10  ;;  %p1293_p1 = scmp.lt.u32.totalorder %s1712_s9, %s1760_s4 }
 0x326   : > { %p1294_p3 = scmp.lt.u32.totalorder %s1292_s12, %s1288_s10  ;;  %p1296_p6 = scmp.lt.u32.totalorder %s1288_s10, %s1712_s9 }
 0x327   : > { %p1290_p7 = pnand %p1289_p5, %p1767_p12 }
 0x328   : > { %p1295_p11 = por %p1294_p3, %p1293_p1 }
 0x329   : > { %p1291_p9 = pneg %p1290_p7 }
 0x32a   : > { %p1297_p13 = por %p1296_p6, %p1295_p11 }
 0x32c   : > { %p1298_p8 = pnand %p1297_p13, %p1291_p9 }
 0x32e   : > { %1301 = shalt.err (!%p1298_p8)
}
 0x32f   : > { %s1351_s29 = smov 128   ;;  %s1352_s5 = smov 8  }
 0x330   : > { %1187 = dma.vmem_to_hbm [thread:$0]  (%p1767_p12), %s1706_s30, 512, %s1712_s9, %s752_s19, %s1351_s29, %s1351_s29, %s1352_s5  }
 0x331 PF: > { %s780_s6 = sand.u32 1, %s1328_s15   ;;  %p1768_p10 = scmp.ne.s32.totalorder %s1765_s28, 0 }
 0x332   : > { %p1769_p0 = scmp.ge.s32.totalorder %s1340_s18, 2  ;;  %s781_s7 = scalar_lea.sflag [#allocation4], %s780_s6 }
 0x334   : > { %p1194_p2 = pnand %p1769_p0, %p1768_p10 }
 0x336   : > { %1323 = dma.done.wait (!%p1194_p2), %s781_s7, 512  }
 0x337   : > { %1325 = vsyncadd (!%p1194_p2), %s781_s7, 4294966784  ;;  %p17_p4 = scmp.ge.s32.totalorder %s1403_s21, 4   ;;  %s1770_s15 = smov %s1332_s16 }
 0x338   : > { %s1771_s16 = smov %s1336_s17  ;;  %s1772_s17 = smov %s1415_s24 }
 0x339   : > { %s1773_s18 = smov %s1403_s21  ;;  %19 = sbr.rel (!%p17_p4) target bundleno = 5 (0x5), region = 84 }
 0x340   :  { %786 = vsyncpa [#allocation3], 1 }
 0x341   :  { %788 = vsyncpa [#allocation3 + $0x1], 1 }
 0x342   :  { %789 = vsyncpa [#allocation4], 1 }
 0x343   :  { %791 = vsyncpa [#allocation4 + $0x1], 1 }

</bundles_post_ra>
